<compile_context>
chip_gen: v5e
topology: v5e:2x2
jax: 0.10.0
libtpu: 0.0.40
codegen_flags: <defaults>
</compile_context>

<pallas_src>
import math
from functools import partial

import jax
import jax.numpy as jnp
from jax.experimental import pallas as pl
from jax.experimental.pallas import tpu as pltpu


def _pick_row_tile(Ho, C, k, W, itemsize, target_bytes=1 << 20):
    """Number of *output* rows per block.

    Multiple of 8 (or == Ho) so the output BlockSpec keeps (8,128)-friendly
    tiling; sized so the input block is ~1 MiB.
    """
    if Ho <= 8:
        return Ho
    per_row_bytes = max(1, C * k * W * itemsize)
    th = max(1, target_bytes // per_row_bytes)
    th = min(th, Ho)
    th = (th // 8) * 8
    return max(8, th)


def _subsampling_kernel(x_ref, w_ref, sel_ref, b_ref, o_ref):
    # x_ref:   (1, C, TH, k, W)   natural NCHW rows covering TH output rows
    # w_ref:   (k, k, Cout, C)    conv weight, tap-major
    # sel_ref: (k, W, Wo)         0/1 lane-selection matrices (one per kw)
    # b_ref:   (Cout, 1, 1)       bias
    # o_ref:   (1, Cout, TH, Wo)  output block (already NCHW)
    _, C, TH, k, W = x_ref.shape
    Cout = w_ref.shape[2]
    Wo = sel_ref.shape[2]

    acc = jnp.zeros((Cout, TH, Wo), jnp.float32)
    for kh in range(k):                       # k*k taps, statically unrolled
        xk = x_ref[0, :, :, kh, :]            # (C, TH, W)
        xk2 = xk.reshape(C * TH, W)           # merge leading dims; lane dim unchanged
        for kw in range(k):
            # stride-k gather along lanes as a matmul with a 0/1 matrix (MXU)
            y = jnp.dot(xk2, sel_ref[kw], preferred_element_type=jnp.float32)
            y = y.reshape(C, TH, Wo)          # split leading dim back out
            wt = w_ref[kh, kw]                # (Cout, C)
            # channel contraction on the VPU (C is small for this module)
            acc = acc + jnp.sum(wt[:, :, None, None] * y[None, :, :, :], axis=1)

    o_ref[0] = (acc + b_ref[...]).astype(o_ref.dtype)


@partial(jax.jit, static_argnums=(3,))
def subsampling_forward(x, weight, bias, kernel_size):
    """Forward pass of Subsampling (Conv2d with stride == kernel_size).

    x:      (N, C, H, W)   NCHW, like PyTorch
    weight: (C, C, k, k)   (out_channels, in_channels, kh, kw), like PyTorch
    bias:   (C,)
    returns (N, C, H//k, W//k)  in NCHW
    """
    k = kernel_size
    N, C, H, W = x.shape
    Cout = weight.shape[0]
    assert H % k == 0 and W % k == 0, "spatial dims must be divisible by kernel_size"
    Ho, Wo = H // k, W // k

    # Free (row-major) reshape only -- no HBM shuffle of the activations.
    x5 = x.reshape(N, C, Ho, k, W)

    # Tiny parameter-side rearrangements.
    w_taps = jnp.transpose(weight, (2, 3, 0, 1)).astype(jnp.float32)   # (k, k, Cout, C)
    b3 = bias.reshape(Cout, 1, 1).astype(jnp.float32)

    # 0/1 lane-selection matrices: sel[kw, w, wo] = 1  iff  w == wo*k + kw
    w_idx = jnp.arange(W, dtype=jnp.int32)[None, :, None]
    wo_idx = jnp.arange(Wo, dtype=jnp.int32)[None, None, :]
    kw_idx = jnp.arange(k, dtype=jnp.int32)[:, None, None]
    sel = (w_idx == wo_idx * k + kw_idx).astype(jnp.float32)           # (k, W, Wo)

    TH = _pick_row_tile(Ho, C, k, W, x.dtype.itemsize)
    T = pl.cdiv(Ho, TH)   # partial edge block is masked on writeback; no jnp.pad

    conv_flops = 2 * N * Ho * Wo * Cout * C * k * k
    sel_flops = 2 * N * Ho * Wo * C * W * k * k
    bytes_accessed = (x.size * x.dtype.itemsize
                      + w_taps.size * 4 + b3.size * 4 + sel.size * 4
                      + N * Cout * Ho * Wo * x.dtype.itemsize)

    return pl.pallas_call(
        _subsampling_kernel,
        out_shape=jax.ShapeDtypeStruct((N, Cout, Ho, Wo), x.dtype),
        grid_spec=pltpu.PrefetchScalarGridSpec(
            num_scalar_prefetch=0,
            grid=(N, T),
            in_specs=[
                pl.BlockSpec((1, C, TH, k, W), lambda n, t: (n, 0, t, 0, 0)),
                pl.BlockSpec((k, k, Cout, C), lambda n, t: (0, 0, 0, 0)),
                pl.BlockSpec((k, W, Wo), lambda n, t: (0, 0, 0)),
                pl.BlockSpec((Cout, 1, 1), lambda n, t: (0, 0, 0)),
            ],
            out_specs=pl.BlockSpec((1, Cout, TH, Wo), lambda n, t: (n, 0, t, 0)),
        ),
        compiler_params=pltpu.CompilerParams(
            dimension_semantics=("parallel", "parallel")),
        cost_estimate=pl.CostEstimate(
            flops=conv_flops + sel_flops,
            transcendentals=0,
            bytes_accessed=bytes_accessed),
    )(x5, w_taps, sel, b3)


def init_params(key, channels, kernel_size):
    """Deterministic Conv2d-style init (uniform(-b, b), b = 1/sqrt(fan_in))."""
    k = kernel_size
    fan_in = channels * k * k
    bound = 1.0 / math.sqrt(fan_in)
    kw, kb = jax.random.split(key)
    weight = jax.random.uniform(
        kw, (channels, channels, k, k), jnp.float32, -bound, bound
    )
    bias = jax.random.uniform(kb, (channels,), jnp.float32, -bound, bound)
    return weight, bias


if __name__ == "__main__":
    key = jax.random.PRNGKey(0)
    kx, kp = jax.random.split(key)

    N, C, H, W = 2, 4, 16, 16
    KSZ = 2

    x = jax.random.normal(kx, (N, C, H, W), jnp.float32)
    weight, bias = init_params(kp, C, KSZ)

    y = subsampling_forward(x, weight, bias, KSZ)
    y = jax.block_until_ready(y)

    # Reference check against XLA conv (same semantics as nn.Conv2d stride=k).
    y_ref = jax.lax.conv_general_dilated(
        x, weight,
        window_strides=(KSZ, KSZ),
        padding="VALID",
        dimension_numbers=("NCHW", "OIHW", "NCHW"),
    ) + bias.reshape(1, C, 1, 1)

    assert y.shape == (N, C, H // KSZ, W // KSZ)
    assert jnp.allclose(y, y_ref, atol=1e-4, rtol=1e-4), float(
        jnp.max(jnp.abs(y - y_ref)))

    print("KERNEL_OK")
</pallas_src>

<mosaic_0001>
module attributes {stable_mosaic.version = 11 : i64} {
  func.func @_subsampling_kernel(%arg0: i32, %arg1: i32, %arg2: memref<1x4x8x2x16xf32, #tpu.memory_space<vmem>>, %arg3: memref<2x2x4x4xf32, #tpu.memory_space<vmem>>, %arg4: memref<2x16x8xf32, #tpu.memory_space<vmem>>, %arg5: memref<4x1x1xf32, #tpu.memory_space<vmem>>, %arg6: memref<1x4x8x8xf32, #tpu.memory_space<vmem>>) attributes {dimension_semantics = [#tpu.dimension_semantics<parallel>, #tpu.dimension_semantics<parallel>], iteration_bounds = array<i64: 2, 1>, scalar_prefetch = 0 : i64, scratch_operands = 0 : i64, tpu.core_type = #tpu.core_type<tc>, window_params = [{transform_indices = @transform_0, window_bounds = array<i64: 1, 4, 8, 2, 16>}, {pipeline_mode = #tpu.pipeline_mode<synchronous>, transform_indices = @transform_1, window_bounds = array<i64: 2, 2, 4, 4>}, {pipeline_mode = #tpu.pipeline_mode<synchronous>, transform_indices = @transform_2, window_bounds = array<i64: 2, 16, 8>}, {pipeline_mode = #tpu.pipeline_mode<synchronous>, transform_indices = @transform_3, window_bounds = array<i64: 4, 1, 1>}, {transform_indices = @transform_4, window_bounds = array<i64: 1, 4, 8, 8>}]} {
    %cst = arith.constant 0.000000e+00 : f32
    %0 = vector.broadcast %cst : f32 to vector<4x8x8xf32>
    %c0 = arith.constant 0 : index
    %c0_0 = arith.constant 0 : index
    %c0_1 = arith.constant 0 : index
    %c0_2 = arith.constant 0 : index
    %c0_3 = arith.constant 0 : index
    %1 = vector.load %arg2[%c0, %c0_0, %c0_1, %c0_2, %c0_3] : memref<1x4x8x2x16xf32, #tpu.memory_space<vmem>>, vector<1x4x8x1x16xf32>
    %2 = vector.shape_cast %1 : vector<1x4x8x1x16xf32> to vector<4x8x16xf32>
    %3 = vector.shape_cast %2 : vector<4x8x16xf32> to vector<32x16xf32>
    %c0_4 = arith.constant 0 : index
    %c0_5 = arith.constant 0 : index
    %c0_6 = arith.constant 0 : index
    %4 = vector.load %arg4[%c0_4, %c0_5, %c0_6] : memref<2x16x8xf32, #tpu.memory_space<vmem>>, vector<1x16x8xf32>
    %5 = vector.shape_cast %4 : vector<1x16x8xf32> to vector<16x8xf32>
    %cst_7 = arith.constant dense<0.000000e+00> : vector<32x8xf32>
    %6 = tpu.matmul %3, %5, %cst_7 {dimension_numbers = #tpu.dot_dimension_numbers<[1], [0], [0], [1], [0, 0, 1, 1], [], []>} : vector<32x16xf32>, vector<16x8xf32>, vector<32x8xf32> -> vector<32x8xf32>
    %7 = vector.shape_cast %6 : vector<32x8xf32> to vector<4x8x8xf32>
    %c0_8 = arith.constant 0 : index
    %c0_9 = arith.constant 0 : index
    %c0_10 = arith.constant 0 : index
    %c0_11 = arith.constant 0 : index
    %8 = vector.load %arg3[%c0_8, %c0_9, %c0_10, %c0_11] : memref<2x2x4x4xf32, #tpu.memory_space<vmem>>, vector<1x1x4x4xf32>
    %9 = vector.shape_cast %8 : vector<1x1x4x4xf32> to vector<4x4xf32>
    %10 = vector.shape_cast %9 : vector<4x4xf32> to vector<4x4x1x1xf32>
    %11 = vector.shape_cast %7 : vector<4x8x8xf32> to vector<1x4x8x8xf32>
    %12 = vector.broadcast %10 : vector<4x4x1x1xf32> to vector<4x4x8x8xf32>
    %13 = vector.broadcast %11 : vector<1x4x8x8xf32> to vector<4x4x8x8xf32>
    %14 = arith.mulf %12, %13 : vector<4x4x8x8xf32>
    %cst_12 = arith.constant dense<0.000000e+00> : vector<4x8x8xf32>
    %15 = vector.multi_reduction <add>, %14, %cst_12 [1] : vector<4x4x8x8xf32> to vector<4x8x8xf32>
    %16 = arith.addf %0, %15 : vector<4x8x8xf32>
    %c1 = arith.constant 1 : index
    %c0_13 = arith.constant 0 : index
    %c0_14 = arith.constant 0 : index
    %17 = vector.load %arg4[%c1, %c0_13, %c0_14] : memref<2x16x8xf32, #tpu.memory_space<vmem>>, vector<1x16x8xf32>
    %18 = vector.shape_cast %17 : vector<1x16x8xf32> to vector<16x8xf32>
    %cst_15 = arith.constant dense<0.000000e+00> : vector<32x8xf32>
    %19 = tpu.matmul %3, %18, %cst_15 {dimension_numbers = #tpu.dot_dimension_numbers<[1], [0], [0], [1], [0, 0, 1, 1], [], []>} : vector<32x16xf32>, vector<16x8xf32>, vector<32x8xf32> -> vector<32x8xf32>
    %20 = vector.shape_cast %19 : vector<32x8xf32> to vector<4x8x8xf32>
    %c0_16 = arith.constant 0 : index
    %c1_17 = arith.constant 1 : index
    %c0_18 = arith.constant 0 : index
    %c0_19 = arith.constant 0 : index
    %21 = vector.load %arg3[%c0_16, %c1_17, %c0_18, %c0_19] : memref<2x2x4x4xf32, #tpu.memory_space<vmem>>, vector<1x1x4x4xf32>
    %22 = vector.shape_cast %21 : vector<1x1x4x4xf32> to vector<4x4xf32>
    %23 = vector.shape_cast %22 : vector<4x4xf32> to vector<4x4x1x1xf32>
    %24 = vector.shape_cast %20 : vector<4x8x8xf32> to vector<1x4x8x8xf32>
    %25 = vector.broadcast %23 : vector<4x4x1x1xf32> to vector<4x4x8x8xf32>
    %26 = vector.broadcast %24 : vector<1x4x8x8xf32> to vector<4x4x8x8xf32>
    %27 = arith.mulf %25, %26 : vector<4x4x8x8xf32>
    %cst_20 = arith.constant dense<0.000000e+00> : vector<4x8x8xf32>
    %28 = vector.multi_reduction <add>, %27, %cst_20 [1] : vector<4x4x8x8xf32> to vector<4x8x8xf32>
    %29 = arith.addf %16, %28 : vector<4x8x8xf32>
    %c0_21 = arith.constant 0 : index
    %c0_22 = arith.constant 0 : index
    %c0_23 = arith.constant 0 : index
    %c1_24 = arith.constant 1 : index
    %c0_25 = arith.constant 0 : index
    %30 = vector.load %arg2[%c0_21, %c0_22, %c0_23, %c1_24, %c0_25] : memref<1x4x8x2x16xf32, #tpu.memory_space<vmem>>, vector<1x4x8x1x16xf32>
    %31 = vector.shape_cast %30 : vector<1x4x8x1x16xf32> to vector<4x8x16xf32>
    %32 = vector.shape_cast %31 : vector<4x8x16xf32> to vector<32x16xf32>
    %c0_26 = arith.constant 0 : index
    %c0_27 = arith.constant 0 : index
    %c0_28 = arith.constant 0 : index
    %33 = vector.load %arg4[%c0_26, %c0_27, %c0_28] : memref<2x16x8xf32, #tpu.memory_space<vmem>>, vector<1x16x8xf32>
    %34 = vector.shape_cast %33 : vector<1x16x8xf32> to vector<16x8xf32>
    %cst_29 = arith.constant dense<0.000000e+00> : vector<32x8xf32>
    %35 = tpu.matmul %32, %34, %cst_29 {dimension_numbers = #tpu.dot_dimension_numbers<[1], [0], [0], [1], [0, 0, 1, 1], [], []>} : vector<32x16xf32>, vector<16x8xf32>, vector<32x8xf32> -> vector<32x8xf32>
    %36 = vector.shape_cast %35 : vector<32x8xf32> to vector<4x8x8xf32>
    %c1_30 = arith.constant 1 : index
    %c0_31 = arith.constant 0 : index
    %c0_32 = arith.constant 0 : index
    %c0_33 = arith.constant 0 : index
    %37 = vector.load %arg3[%c1_30, %c0_31, %c0_32, %c0_33] : memref<2x2x4x4xf32, #tpu.memory_space<vmem>>, vector<1x1x4x4xf32>
    %38 = vector.shape_cast %37 : vector<1x1x4x4xf32> to vector<4x4xf32>
    %39 = vector.shape_cast %38 : vector<4x4xf32> to vector<4x4x1x1xf32>
    %40 = vector.shape_cast %36 : vector<4x8x8xf32> to vector<1x4x8x8xf32>
    %41 = vector.broadcast %39 : vector<4x4x1x1xf32> to vector<4x4x8x8xf32>
    %42 = vector.broadcast %40 : vector<1x4x8x8xf32> to vector<4x4x8x8xf32>
    %43 = arith.mulf %41, %42 : vector<4x4x8x8xf32>
    %cst_34 = arith.constant dense<0.000000e+00> : vector<4x8x8xf32>
    %44 = vector.multi_reduction <add>, %43, %cst_34 [1] : vector<4x4x8x8xf32> to vector<4x8x8xf32>
    %45 = arith.addf %29, %44 : vector<4x8x8xf32>
    %c1_35 = arith.constant 1 : index
    %c0_36 = arith.constant 0 : index
    %c0_37 = arith.constant 0 : index
    %46 = vector.load %arg4[%c1_35, %c0_36, %c0_37] : memref<2x16x8xf32, #tpu.memory_space<vmem>>, vector<1x16x8xf32>
    %47 = vector.shape_cast %46 : vector<1x16x8xf32> to vector<16x8xf32>
    %cst_38 = arith.constant dense<0.000000e+00> : vector<32x8xf32>
    %48 = tpu.matmul %32, %47, %cst_38 {dimension_numbers = #tpu.dot_dimension_numbers<[1], [0], [0], [1], [0, 0, 1, 1], [], []>} : vector<32x16xf32>, vector<16x8xf32>, vector<32x8xf32> -> vector<32x8xf32>
    %49 = vector.shape_cast %48 : vector<32x8xf32> to vector<4x8x8xf32>
    %c1_39 = arith.constant 1 : index
    %c1_40 = arith.constant 1 : index
    %c0_41 = arith.constant 0 : index
    %c0_42 = arith.constant 0 : index
    %50 = vector.load %arg3[%c1_39, %c1_40, %c0_41, %c0_42] : memref<2x2x4x4xf32, #tpu.memory_space<vmem>>, vector<1x1x4x4xf32>
    %51 = vector.shape_cast %50 : vector<1x1x4x4xf32> to vector<4x4xf32>
    %52 = vector.shape_cast %51 : vector<4x4xf32> to vector<4x4x1x1xf32>
    %53 = vector.shape_cast %49 : vector<4x8x8xf32> to vector<1x4x8x8xf32>
    %54 = vector.broadcast %52 : vector<4x4x1x1xf32> to vector<4x4x8x8xf32>
    %55 = vector.broadcast %53 : vector<1x4x8x8xf32> to vector<4x4x8x8xf32>
    %56 = arith.mulf %54, %55 : vector<4x4x8x8xf32>
    %cst_43 = arith.constant dense<0.000000e+00> : vector<4x8x8xf32>
    %57 = vector.multi_reduction <add>, %56, %cst_43 [1] : vector<4x4x8x8xf32> to vector<4x8x8xf32>
    %58 = arith.addf %45, %57 : vector<4x8x8xf32>
    %c0_44 = arith.constant 0 : index
    %c0_45 = arith.constant 0 : index
    %c0_46 = arith.constant 0 : index
    %59 = vector.load %arg5[%c0_44, %c0_45, %c0_46] : memref<4x1x1xf32, #tpu.memory_space<vmem>>, vector<4x1x1xf32>
    %60 = vector.broadcast %59 : vector<4x1x1xf32> to vector<4x8x8xf32>
    %61 = arith.addf %58, %60 : vector<4x8x8xf32>
    %c0_47 = arith.constant 0 : index
    %c0_48 = arith.constant 0 : index
    %c0_49 = arith.constant 0 : index
    %c0_50 = arith.constant 0 : index
    %62 = vector.load %arg6[%c0_47, %c0_48, %c0_49, %c0_50] : memref<1x4x8x8xf32, #tpu.memory_space<vmem>>, vector<1x4x8x8xf32>
    %63 = vector.shape_cast %62 : vector<1x4x8x8xf32> to vector<4x8x8xf32>
    %64 = vector.shape_cast %61 : vector<4x8x8xf32> to vector<1x4x8x8xf32>
    tpu.vector_store %arg6[%c0_47, %c0_48, %c0_49, %c0_50], %64 {strides = array<i32>} : memref<1x4x8x8xf32, #tpu.memory_space<vmem>>, vector<1x4x8x8xf32>,
    return
  }
  func.func @transform_0(%arg0: i32, %arg1: i32) -> (i32, i32, i32, i32, i32) {
    %c0_i32 = arith.constant 0 : i32
    %c0_i32_0 = arith.constant 0 : i32
    %c0_i32_1 = arith.constant 0 : i32
    %c0_i32_2 = arith.constant 0 : i32
    return %arg0, %c0_i32, %arg1, %c0_i32_0, %c0_i32_1 : i32, i32, i32, i32, i32
  }
  func.func @transform_1(%arg0: i32, %arg1: i32) -> (i32, i32, i32, i32) {
    %c0_i32 = arith.constant 0 : i32
    %c0_i32_0 = arith.constant 0 : i32
    %c0_i32_1 = arith.constant 0 : i32
    %c0_i32_2 = arith.constant 0 : i32
    %c0_i32_3 = arith.constant 0 : i32
    return %c0_i32, %c0_i32_0, %c0_i32_1, %c0_i32_2 : i32, i32, i32, i32
  }
  func.func @transform_2(%arg0: i32, %arg1: i32) -> (i32, i32, i32) {
    %c0_i32 = arith.constant 0 : i32
    %c0_i32_0 = arith.constant 0 : i32
    %c0_i32_1 = arith.constant 0 : i32
    %c0_i32_2 = arith.constant 0 : i32
    return %c0_i32, %c0_i32_0, %c0_i32_1 : i32, i32, i32
  }
  func.func @transform_3(%arg0: i32, %arg1: i32) -> (i32, i32, i32) {
    %c0_i32 = arith.constant 0 : i32
    %c0_i32_0 = arith.constant 0 : i32
    %c0_i32_1 = arith.constant 0 : i32
    %c0_i32_2 = arith.constant 0 : i32
    return %c0_i32, %c0_i32_0, %c0_i32_1 : i32, i32, i32
  }
  func.func @transform_4(%arg0: i32, %arg1: i32) -> (i32, i32, i32, i32) {
    %c0_i32 = arith.constant 0 : i32
    %c0_i32_0 = arith.constant 0 : i32
    %c0_i32_1 = arith.constant 0 : i32
    return %arg0, %c0_i32, %arg1, %c0_i32_0 : i32, i32, i32, i32
  }
}

</mosaic_0001>

<bundles_post_ra>
// kernel: subsampling_forward.1
= control target key start
LH: loop header
LB: loop body
LE: loop exit
PB: predicated region body
PF: predicated region fallthrough
CT: control target
= control target key end

     0   :  { %9 = vsyncpa [#allocation3], 0  ;;  %s2016_s0 = inlined_call_operand.hbm [shape: f32[2,4,8,2,16], index: 0, kind: input, shape index: {}]   ;;  %s2017_s1 = inlined_call_operand.vmem [shape: f32[2,2,4,4], index: 1, kind: input, shape index: {}]   ;;  %s2018_s2 = inlined_call_operand.vmem [shape: f32[2,16,8], index: 2, kind: input, shape index: {}]   ;;  %s2019_s3 = inlined_call_operand.vmem [shape: f32[4,1,1], index: 3, kind: input, shape index: {}]   ;;  %s2020_s4 = inlined_call_operand.hbm [shape: f32[2,4,8,8], index: 4, kind: output, shape index: {}]  }
   0x1   :  { %11 = vsyncpa [#allocation3 + $0x1], 0 }
   0x2   :  { %12 = vsyncpa [#allocation4], 0 }
   0x3   :  { %14 = vsyncpa [#allocation4 + $0x1], 0  ;;  %s1396_s15 = smov 0   ;;  %s1398_s16 = smov 0  }
   0x4   :  { %s1400_s17 = smov 0   ;;  %s1402_s18 = smov 0  }
   0x5   :  { %s1404_s19 = smov 0   ;;  %s1406_s20 = smov 0  }
   0x6 LB: > { %s1137_s21 = sadd.s32 4294967295, %s1364_s20   ;;  %s1138_s22 = sadd.s32 4294967294, %s1364_s20   ;;  %s1364_s20 = sphi %s1406_s20, %s20_s20   ;;  %s1360_s19 = sphi %s1404_s19, %s2050_s19   ;;  %s1356_s18 = sphi %s1402_s18, %s2049_s18   ;;  %s1352_s17 = sphi %s1400_s17, %s2048_s17   ;;  %s1348_s16 = sphi %s1398_s16, %s2047_s16   ;;  %s1344_s15 = sphi %s1396_s15, %s2046_s15  }
   0x7   : > { %s32_s23 = sadd.s32 1, %s1360_s19  ;;  %s41_s24 = sadd.s32 1, %s1352_s17 }
   0x8   : > { %p34_p0 = scmp.ge.s32.totalorder %s32_s23, 2  ;;  %p48_p1 = scmp.ne.s32.totalorder %s1352_s17, %s1348_s16 }
   0x9   : > { %p49_p2 = scmp.eq.s32.totalorder %s1364_s20, 0  ;;  %p54_p3 = scmp.ne.s32.totalorder %s1348_s16, %s1344_s15 }
   0xa   : > { %s2052_s23 = smov (%p34_p0, %s32_s23), 0  ;;  %p55_p5 = scmp.eq.s32.totalorder %s1137_s21, 0 }
   0xb   : > { %p1437_p4 = por %p49_p2, %p48_p1  ;;  %s36_s26 = ssub.s32 %s1360_s19, %s2052_s23 }
   0xc   : > { %p143_p6 = scmp.eq.s32.totalorder %s1137_s21, 1  ;;  %p39_p7 = scmp.eq.s32.totalorder %s36_s26, 0 }
   0xd   : > { %p1443_p8 = por %p55_p5, %p54_p3  ;;  %p149_p10 = scmp.eq.s32.totalorder %s1138_s22, 1 }
   0xe   : > { %p1447_p9 = por %p143_p6, %p48_p1  ;;  %p1140_p12 = scmp.ge.s32.totalorder %s1364_s20, 2 }
   0xf   : > { %s1452_s29 = scalar_select %p39_p7, %s1352_s17, %s41_s24  }
  0x10   : > { %p1454_p11 = por %p149_p10, %p54_p3  ;;  %p1187_p13 = scmp.lt.s32.totalorder %s1364_s20, 2 }
  0x11   : > { %s178_s5 = sand.u32 1, %s1352_s17   ;;  %s1173_s7 = sshll.u32 %s1360_s19, 6 }
  0x12   : > { %s1141_s6 = sshll.u32 %s178_s5, 6  ;;  %s189_s10 = scalar_lea.hbm %s2016_s0, %s1173_s7 }
  0x13   : > { %s182_s11 = scalar_lea.vmem [#allocation2], %s1141_s6  ;;  %s190_s13 = sshll.u32 %s189_s10, 4  ;;  %s191_s13 = int_to_ptr.hbm [resolvable:$true] %s190_s13 }
  0x14   : > { %s192_s12 = sshll.u32 %s182_s11, 4  ;;  %p1180_p0 = pnand %p1187_p13, %p1437_p4  ;;  %s193_s12 = int_to_ptr.vmem [resolvable:$true] %s192_s12 }
  0x15   : > { %p1144_p1 = scmp.ge.s32.totalorder %s1364_s20, 1  ;;  %s179_s14 = scalar_lea.sflag [#allocation3], %s178_s5 }
  0x16   : > { %s1366_s21 = smov 32   ;;  %s1367_s22 = smov 2  }
  0x17   : > { %1182 = dma.hbm_to_vmem [thread:$0]  (!%p1180_p0), %s191_s13, 1024, %s193_s12, %s179_s14, %s1366_s21, %s1366_s21, %s1367_s22  }
  0x18   : > { %p200_p2 = scmp.lt.s32.totalorder %s1364_s20, 3 }
  0x1a   : > { %p201_p3 = pnand %p1144_p1, %p200_p2 }
  0x1c   : > { %204 = sbr.rel (%p201_p3) target bundleno = 248 (0xf8), region = 36 }
  0x21   : > { %s1470_s24 = sand.u32 1, %s1348_s16  }
  0x22   : > { %s1145_s26 = sshll.u32 %s1470_s24, 6  ;;  %s207_s6 = scalar_lea.sflag [#allocation3], %s1470_s24 }
  0x23   : > { %s1474_s7 = scalar_lea.vmem [#allocation2], %s1145_s26 }
  0x24   : > { %1335 = dma.done.wait (%p1443_p8), %s207_s6, 1024  }
  0x25   : > { %1337 = vsyncadd (%p1443_p8), %s207_s6, 4294966272  ;;  %v406_v0 = vlaneseq  ;;  %vm304_vm0 = vcmask 1041409   ;;  %vm307_vm1 = vcmask 1042434   ;;  %vm310_vm2 = vcmask 1043459   ;;  %v1483_v2 = vld [vmem:[%s2017_s1] sm:$0xf] }
  0x26   : > { %vm313_vm3 = vcmask 1044484   ;;  %vm316_vm4 = vcmask 1045509   ;;  %v1488_v3 = vld [vmem:[%s2017_s1 + $0x4] sm:$0xf]  ;;  %v270_v4 = vld [vmem:[%s2018_s2 + $0x8] sm:$0xff]  ;;  %vm319_vm5 = vcmask 1046534  }
  0x27   : > { %v407_v1 = vshrl.u32 %v406_v0, 7  ;;  %v419_v5 = vperm.slane %v1483_v2, 2  ;;  %v405_v6 = vperm.slane %v1483_v2, 0  ;;  %v532_v7 = vperm.slane %v1488_v3, 0  ;;  %389 = vmatpush.msra.mxu0 %v270_v4  ;;  %v1152_v8 = vld [vmem:[%s2018_s2 + $0x18] sm:$0xff]  ;;  %766 = vmatpush.msra.mxu2 %v270_v4  ;;  %v269_v9 = vld [vmem:[%s2018_s2] sm:$0xff] }
  0x28   : > { %v1151_v10 = vld [vmem:[%s2018_s2 + $0x10] sm:$0xff]  ;;  %vm322_vm6 = vcmask 1047559   ;;  %515 = vmatpush.msra.mxu1 %v1152_v8  ;;  %889 = vmatpush.msra.mxu3 %v1152_v8  ;;  %v237_v11 = vld [vmem:[%s1474_s7] sm:$0x1]  ;;  %v238_v12 = vld [vmem:[%s1474_s7 + $0x2] sm:$0x1] }
  0x29   : > { %1243 = vset.pattern.permute.xlu1 %v407_v1  ;;  %1242 = vset.pattern.permute.xlu0 %v407_v1  ;;  %v239_v13 = vld [vmem:[%s1474_s7 + $0x4] sm:$0x1]  ;;  %vm366_vm7 = vcmask 130048   ;;  %v240_v14 = vld [vmem:[%s1474_s7 + $0x6] sm:$0x1]  ;;  %v303_v19 = vrot.slane %v238_v12, 7 }
  0x2a   : > { %1244 = vset.pattern.permute.xlu2 %v407_v1  ;;  %390 = vmatpush.msra.mxu0 %v269_v9  ;;  %v241_v15 = vld [vmem:[%s1474_s7 + $0x8] sm:$0x1]  ;;  %v242_v16 = vld [vmem:[%s1474_s7 + $0xa] sm:$0x1]  ;;  %v243_v17 = vld [vmem:[%s1474_s7 + $0xc] sm:$0x1] }
  0x2b   : > { %767 = vmatpush.msra.mxu2 %v269_v9  ;;  %516 = vmatpush.msra.mxu1 %v1151_v10  ;;  %v244_v18 = vld [vmem:[%s1474_s7 + $0xe] sm:$0x1]  ;;  %v306_v20 = vrot.slane %v239_v13, 6  ;;  %v309_v21 = vrot.slane %v240_v14, 5  ;;  %v312_v22 = vrot.slane %v241_v15, 4  ;;  %v315_v23 = vrot.slane %v242_v16, 3 }
  0x2c   : > { %890 = vmatpush.msra.mxu3 %v1151_v10  ;;  %v318_v24 = vrot.slane %v243_v17, 2  ;;  %v624_v25 = vld [vmem:[%s1474_s7 + $0x1] sm:$0x1]  ;;  %v305_v26 = vsel %vm304_vm0, %v303_v19, %v237_v11  ;;  %v321_v27 = vrot.slane %v244_v18, 1  ;;  %v625_v28 = vld [vmem:[%s1474_s7 + $0x3] sm:$0x1] }
  0x2d   : > { %v626_v29 = vld [vmem:[%s1474_s7 + $0x5] sm:$0x1]  ;;  %v426_v30 = vperm.slane %v1483_v2, 3  ;;  %v308_v31 = vsel %vm307_vm1, %v306_v20, %v305_v26  ;;  %v627_v32 = vld [vmem:[%s1474_s7 + $0x7] sm:$0x1]  ;;  %v688_v38 = vrot.slane %v625_v28, 7 }
  0x2e   : > { %v628_v33 = vld [vmem:[%s1474_s7 + $0x9] sm:$0x1]  ;;  %v629_v34 = vld [vmem:[%s1474_s7 + $0xb] sm:$0x1]  ;;  %v311_v35 = vsel %vm310_vm2, %v309_v21, %v308_v31  ;;  %v630_v36 = vld [vmem:[%s1474_s7 + $0xd] sm:$0x1] }
  0x2f   : > { %v631_v37 = vld [vmem:[%s1474_s7 + $0xf] sm:$0x1]  ;;  %v690_v39 = vrot.slane %v626_v29, 6  ;;  %v314_v40 = vsel %vm313_vm3, %v312_v22, %v311_v35  ;;  %v692_v41 = vrot.slane %v627_v32, 5  ;;  %v694_v42 = vrot.slane %v628_v33, 4  ;;  %s1146_s14 = sshll.u32 %s1470_s24, 5 }
  0x30   : > { %v696_v43 = vrot.slane %v629_v34, 3  ;;  %v317_v44 = vsel %vm316_vm4, %v315_v23, %v314_v40  ;;  %v689_v45 = vsel %vm304_vm0, %v688_v38, %v624_v25  ;;  %v698_v46 = vrot.slane %v630_v36, 2  ;;  %v245_v48 = vld [vmem:[%s1474_s7 + $0x10] sm:$0x1]  ;;  %v246_v49 = vld [vmem:[%s1474_s7 + $0x12] sm:$0x1] }
  0x31   : > { %424 = vperm.xlu1 %1243, %v419_v5   ;;  %410 = vperm.xlu0 %1242, %v405_v6   ;;  %v700_v47 = vrot.slane %v631_v37, 1  ;;  %v247_v50 = vld [vmem:[%s1474_s7 + $0x14] sm:$0x1]  ;;  %v320_v51 = vsel %vm319_vm5, %v318_v24, %v317_v44  ;;  %v691_v52 = vsel %vm307_vm1, %v690_v39, %v689_v45  ;;  %v412_v53 = vperm.slane %v1483_v2, 1  ;;  %v248_v55 = vld [vmem:[%s1474_s7 + $0x16] sm:$0x1] }
  0x32   : > { %537 = vperm.xlu2 %1244, %v532_v7   ;;  %v539_v54 = vperm.slane %v1488_v3, 1  ;;  %v249_v56 = vld [vmem:[%s1474_s7 + $0x18] sm:$0x1]  ;;  %v323_v57 = vsel %vm322_vm6, %v321_v27, %v320_v51  ;;  %v693_v58 = vsel %vm310_vm2, %v692_v41, %v691_v52  ;;  %v250_v59 = vld [vmem:[%s1474_s7 + $0x1a] sm:$0x1]  ;;  %v324_v63 = vrot.slane %v246_v49, 7 }
  0x33   : > { %v251_v60 = vld [vmem:[%s1474_s7 + $0x1c] sm:$0x1]  ;;  %v252_v61 = vld [vmem:[%s1474_s7 + $0x1e] sm:$0x1]  ;;  %1147 = vmatmul.msk.f32.vlgmr.msra.gmra.mxu0 %vm366_vm7, %v323_v57  ;;  %1153 = vmatmul.msk.f32.vlgmr.msra.gmra.mxu1 %vm366_vm7, %v323_v57  ;;  %v695_v62 = vsel %vm313_vm3, %v694_v42, %v693_v58  ;;  %v326_v0 = vrot.slane %v247_v50, 6  ;;  %v328_v1 = vrot.slane %v248_v55, 5 }
  0x34   : > { %v632_v2 = vld [vmem:[%s1474_s7 + $0x11] sm:$0x1]  ;;  %v697_v4 = vsel %vm316_vm4, %v696_v43, %v695_v62  ;;  %v330_v5 = vrot.slane %v249_v56, 4  ;;  %v332_v6 = vrot.slane %v250_v59, 3  ;;  %v334_v7 = vrot.slane %v251_v60, 2  ;;  %s1174_s21 = sshll.u32 %s1356_s18, 5 }
  0x35   : > { %v633_v8 = vld [vmem:[%s1474_s7 + $0x13] sm:$0x1]  ;;  %v699_v9 = vsel %vm319_vm5, %v698_v46, %v697_v4  ;;  %v325_v10 = vsel %vm304_vm0, %v324_v63, %v245_v48  ;;  %v336_v11 = vrot.slane %v252_v61, 1  ;;  %v634_v12 = vld [vmem:[%s1474_s7 + $0x15] sm:$0x1]  ;;  %v553_v33 = vperm.slane %v1488_v3, 3  ;;  %s1047_s6 = scalar_lea.hbm %s2020_s4, %s1174_s21 }
  0x36   : > { %v635_v13 = vld [vmem:[%s1474_s7 + $0x17] sm:$0x1]  ;;  %v702_v14 = vrot.slane %v633_v8, 7  ;;  %v701_v15 = vsel %vm322_vm6, %v700_v47, %v699_v9  ;;  %v327_v16 = vsel %vm307_vm1, %v326_v0, %v325_v10  ;;  %v636_v17 = vld [vmem:[%s1474_s7 + $0x19] sm:$0x1]  ;;  %v704_v23 = vrot.slane %v634_v12, 6 }
  0x37   : > { %v637_v18 = vld [vmem:[%s1474_s7 + $0x1b] sm:$0x1]  ;;  %v638_v19 = vld [vmem:[%s1474_s7 + $0x1d] sm:$0x1]  ;;  %1158 = vmatmul.msk.f32.vlgmr.msra.gmra.mxu2 %vm366_vm7, %v701_v15  ;;  %1163 = vmatmul.msk.f32.vlgmr.msra.gmra.mxu3 %vm366_vm7, %v701_v15  ;;  %v329_v20 = vsel %vm310_vm2, %v328_v1, %v327_v16  ;;  %v639_v21 = vld [vmem:[%s1474_s7 + $0x1f] sm:$0x1] }
  0x38   : > { %v703_v22 = vsel %vm304_vm0, %v702_v14, %v632_v2  ;;  %v706_v24 = vrot.slane %v635_v13, 5  ;;  %v1565_v25 = vld [vmem:[%s2017_s1 + $0x8] sm:$0xf]  ;;  %v331_v26 = vsel %vm313_vm3, %v330_v5, %v329_v20  ;;  %v708_v27 = vrot.slane %v636_v17, 4  ;;  %v253_v34 = vld [vmem:[%s1474_s7 + $0x20] sm:$0x1] }
  0x39   : > { %431 = vperm.xlu1 %1243, %v426_v30   ;;  %417 = vperm.xlu0 %1242, %v412_v53   ;;  %v710_v28 = vrot.slane %v637_v18, 3  ;;  %v712_v29 = vrot.slane %v638_v19, 2  ;;  %v333_v30 = vsel %vm316_vm4, %v332_v6, %v331_v26  ;;  %v705_v31 = vsel %vm307_vm1, %v704_v23, %v703_v22  ;;  %v254_v35 = vld [vmem:[%s1474_s7 + $0x22] sm:$0x1]  ;;  %v255_v36 = vld [vmem:[%s1474_s7 + $0x24] sm:$0x1] }
  0x3a   : > { %544 = vperm.xlu2 %1244, %v539_v54   ;;  %v714_v32 = vrot.slane %v639_v21, 1  ;;  %v335_v37 = vsel %vm319_vm5, %v334_v7, %v333_v30  ;;  %v707_v38 = vsel %vm310_vm2, %v706_v24, %v705_v31  ;;  %v546_v39 = vperm.slane %v1488_v3, 2  ;;  %v256_v41 = vld [vmem:[%s1474_s7 + $0x26] sm:$0x1]  ;;  %v257_v42 = vld [vmem:[%s1474_s7 + $0x28] sm:$0x1] }
  0x3b   : > { %v783_v40 = vperm.slane %v1565_v25, 0  ;;  %v337_v43 = vsel %vm322_vm6, %v336_v11, %v335_v37  ;;  %v709_v44 = vsel %vm313_vm3, %v708_v27, %v707_v38  ;;  %v258_v45 = vld [vmem:[%s1474_s7 + $0x2a] sm:$0x1]  ;;  %v259_v46 = vld [vmem:[%s1474_s7 + $0x2c] sm:$0x1]  ;;  %v338_v3 = vrot.slane %v254_v35, 7 }
  0x3c   : > { %v260_v47 = vld [vmem:[%s1474_s7 + $0x2e] sm:$0x1]  ;;  %1148 = vmatmul.msk.f32.gmra.mxu0 %vm366_vm7, %v337_v43  ;;  %1154 = vmatmul.msk.f32.gmra.mxu1 %vm366_vm7, %v337_v43  ;;  %v711_v48 = vsel %vm316_vm4, %v710_v28, %v709_v44  ;;  %v340_v49 = vrot.slane %v255_v36, 6  ;;  %v342_v50 = vrot.slane %v256_v41, 5  ;;  %v640_v51 = vld [vmem:[%s1474_s7 + $0x21] sm:$0x1] }
  0x3d   : > { %v713_v52 = vsel %vm319_vm5, %v712_v29, %v711_v48  ;;  %v344_v53 = vrot.slane %v257_v42, 4  ;;  %v346_v54 = vrot.slane %v258_v45, 3  ;;  %v348_v55 = vrot.slane %v259_v46, 2  ;;  %v641_v56 = vld [vmem:[%s1474_s7 + $0x23] sm:$0x1]  ;;  %s235_s22 = scalar_lea.vmem [#allocation5], %s1146_s14 }
  0x3e   : > { %v715_v57 = vsel %vm322_vm6, %v714_v32, %v713_v52  ;;  %v339_v58 = vsel %vm304_vm0, %v338_v3, %v253_v34  ;;  %v350_v59 = vrot.slane %v260_v47, 1  ;;  %v642_v60 = vld [vmem:[%s1474_s7 + $0x25] sm:$0x1]  ;;  %v643_v61 = vld [vmem:[%s1474_s7 + $0x27] sm:$0x1]  ;;  %v716_v62 = vrot.slane %v641_v56, 7 }
  0x3f   : > { %1159 = vmatmul.msk.f32.gmra.mxu2 %vm366_vm7, %v715_v57  ;;  %1164 = vmatmul.msk.f32.gmra.mxu3 %vm366_vm7, %v715_v57  ;;  %v341_v63 = vsel %vm307_vm1, %v340_v49, %v339_v58  ;;  %v644_v0 = vld [vmem:[%s1474_s7 + $0x29] sm:$0x1]  ;;  %v645_v1 = vld [vmem:[%s1474_s7 + $0x2b] sm:$0x1]  ;;  %v646_v2 = vld [vmem:[%s1474_s7 + $0x2d] sm:$0x1] }
  0x40   : > { %v343_v4 = vsel %vm310_vm2, %v342_v50, %v341_v63  ;;  %v647_v5 = vld [vmem:[%s1474_s7 + $0x2f] sm:$0x1]  ;;  %v717_v6 = vsel %vm304_vm0, %v716_v62, %v640_v51  ;;  %v718_v7 = vrot.slane %v642_v60, 6  ;;  %v720_v8 = vrot.slane %v643_v61, 5  ;;  %v261_v13 = vld [vmem:[%s1474_s7 + $0x30] sm:$0x1] }
  0x41   : > { %558 = vperm.xlu1 %1243, %v553_v33   ;;  %551 = vperm.xlu0 %1242, %v546_v39   ;;  %v345_v9 = vsel %vm313_vm3, %v344_v53, %v343_v4  ;;  %v722_v10 = vrot.slane %v644_v0, 4  ;;  %v724_v11 = vrot.slane %v645_v1, 3  ;;  %v726_v12 = vrot.slane %v646_v2, 2  ;;  %v262_v14 = vld [vmem:[%s1474_s7 + $0x32] sm:$0x1]  ;;  %s1048_s25 = sshll.u32 %s235_s22, 4  ;;  %s1049_s25 = int_to_ptr.vmem [resolvable:$true] %s1048_s25 }
  0x42   : > { %788 = vperm.xlu2 %1244, %v783_v40   ;;  %v347_v15 = vsel %vm316_vm4, %v346_v54, %v345_v9  ;;  %v719_v16 = vsel %vm307_vm1, %v718_v7, %v717_v6  ;;  %v728_v17 = vrot.slane %v647_v5, 1  ;;  %v797_v18 = vperm.slane %v1565_v25, 2  ;;  %v263_v19 = vld [vmem:[%s1474_s7 + $0x34] sm:$0x1]  ;;  %v264_v20 = vld [vmem:[%s1474_s7 + $0x36] sm:$0x1] }
  0x43   : > { %v349_v21 = vsel %vm319_vm5, %v348_v55, %v347_v15  ;;  %v721_v22 = vsel %vm310_vm2, %v720_v8, %v719_v16  ;;  %v790_v23 = vperm.slane %v1565_v25, 1  ;;  %v804_v24 = vperm.slane %v1565_v25, 3  ;;  %v265_v26 = vld [vmem:[%s1474_s7 + $0x38] sm:$0x1]  ;;  %v266_v27 = vld [vmem:[%s1474_s7 + $0x3a] sm:$0x1] }
  0x44   : > { %v351_v28 = vsel %vm322_vm6, %v350_v59, %v349_v21  ;;  %v723_v29 = vsel %vm313_vm3, %v722_v10, %v721_v22  ;;  %v267_v30 = vld [vmem:[%s1474_s7 + $0x3c] sm:$0x1]  ;;  %v352_v31 = vrot.slane %v262_v14, 7  ;;  %v354_v32 = vrot.slane %v263_v19, 6  ;;  %v268_v34 = vld [vmem:[%s1474_s7 + $0x3e] sm:$0x1] }
  0x45   : > { %1149 = vmatmul.msk.f32.gmra.mxu0 %vm366_vm7, %v351_v28  ;;  %1155 = vmatmul.msk.f32.gmra.mxu1 %vm366_vm7, %v351_v28  ;;  %v725_v33 = vsel %vm316_vm4, %v724_v11, %v723_v29  ;;  %v356_v25 = vrot.slane %v264_v20, 5  ;;  %v358_v35 = vrot.slane %v265_v26, 4  ;;  %v648_v36 = vld [vmem:[%s1474_s7 + $0x31] sm:$0x1]  ;;  %v360_v39 = vrot.slane %v266_v27, 3  ;;  %s1050_s5 = sshll.u32 %s1047_s6, 4  ;;  %s1051_s5 = int_to_ptr.hbm [resolvable:$true] %s1050_s5 }
  0x46   : > { %v727_v37 = vsel %vm319_vm5, %v726_v12, %v725_v33  ;;  %v353_v38 = vsel %vm304_vm0, %v352_v31, %v261_v13  ;;  %v362_v40 = vrot.slane %v267_v30, 2  ;;  %v649_v41 = vld [vmem:[%s1474_s7 + $0x33] sm:$0x1]  ;;  %v650_v42 = vld [vmem:[%s1474_s7 + $0x35] sm:$0x1]  ;;  %v364_v3 = vrot.slane %v268_v34, 1 }
  0x47   : > { %v729_v43 = vsel %vm322_vm6, %v728_v17, %v727_v37  ;;  %v355_v44 = vsel %vm307_vm1, %v354_v32, %v353_v38  ;;  %v651_v45 = vld [vmem:[%s1474_s7 + $0x37] sm:$0x1]  ;;  %v652_v46 = vld [vmem:[%s1474_s7 + $0x39] sm:$0x1]  ;;  %v653_v47 = vld [vmem:[%s1474_s7 + $0x3b] sm:$0x1] }
  0x48   : > { %1160 = vmatmul.msk.f32.gmra.mxu2 %vm366_vm7, %v729_v43  ;;  %1165 = vmatmul.msk.f32.gmra.mxu3 %vm366_vm7, %v729_v43  ;;  %v357_v48 = vsel %vm310_vm2, %v356_v25, %v355_v44  ;;  %v654_v49 = vld [vmem:[%s1474_s7 + $0x3d] sm:$0x1]  ;;  %v730_v50 = vrot.slane %v649_v41, 7  ;;  %v732_v51 = vrot.slane %v650_v42, 6  ;;  %v655_v53 = vld [vmem:[%s1474_s7 + $0x3f] sm:$0x1] }
  0x49   : > { %802 = vperm.xlu1 %1243, %v797_v18   ;;  %795 = vperm.xlu0 %1242, %v790_v23   ;;  %v359_v52 = vsel %vm313_vm3, %v358_v35, %v357_v48  ;;  %v734_v54 = vrot.slane %v651_v45, 5  ;;  %v736_v55 = vrot.slane %v652_v46, 4  ;;  %v1167_v56 = vld [vmem:[%s2017_s1 + $0xc] sm:$0xf]  ;;  %v738_v59 = vrot.slane %v653_v47, 3  ;;  %s1035_s7 = scalar_lea.sflag [#allocation4], %s1470_s24 }
  0x4a   : > { %809 = vperm.xlu2 %1244, %v804_v24   ;;  %v361_v57 = vsel %vm316_vm4, %v360_v39, %v359_v52  ;;  %v731_v58 = vsel %vm304_vm0, %v730_v50, %v648_v36  ;;  %v740_v60 = vrot.slane %v654_v49, 2  ;;  %v913_v63 = vperm.slane %v1167_v56, 1  ;;  %v1248_v11 = vld [vmem:[%s2019_s3] ss:$0 sm:$0xff]  ;;  %v1251_v12 = vld [vmem:[%s2019_s3 + $0x1] ss:$0 sm:$0xff] }
  0x4b   : > { %v363_v61 = vsel %vm319_vm5, %v362_v40, %v361_v57  ;;  %v733_v62 = vsel %vm307_vm1, %v732_v51, %v731_v58  ;;  %v906_v0 = vperm.slane %v1167_v56, 0  ;;  %v742_v4 = vrot.slane %v655_v53, 1  ;;  %v1249_v14 = vld [vmem:[%s2019_s3 + $0x3] ss:$0 sm:$0xff]  ;;  %v1250_v15 = vld [vmem:[%s2019_s3 + $0x2] ss:$0 sm:$0xff] }
  0x4c   : > { %v365_v1 = vsel %vm322_vm6, %v364_v3, %v363_v61  ;;  %v735_v2 = vsel %vm310_vm2, %v734_v54, %v733_v62  ;;  %v920_v5 = vperm.slane %v1167_v56, 2  ;;  %v927_v10 = vperm.slane %v1167_v56, 3  ;;  %s1296_s8 = sshra.s32 %s1051_s5, 4  ;;  %s1302_s11 = scalar_lea.hbm %s2020_s4, 64  ;;  %s1297_s8 = int_to_ptr.hbm [resolvable:$true] %s1296_s8 }
  0x4d   : > { %1150 = vmatmul.msk.f32.gmra.mxu0 %vm366_vm7, %v365_v1  ;;  %1156 = vmatmul.msk.f32.gmra.mxu1 %vm366_vm7, %v365_v1  ;;  %v737_v6 = vsel %vm313_vm3, %v736_v55, %v735_v2  ;;  %v1368_v13 = vmov 0   ;;  %vm465_vm8 = vcmask 64512   ;;  %s1298_s9 = scalar_lea.hbm %s1297_s8, 32  ;;  %p1303_p7 = scmp.lt.s32.totalorder %s1297_s8, %s2020_s4 }
  0x4e   : > { %v739_v7 = vsel %vm316_vm4, %v738_v59, %v737_v6  ;;  %p1299_p4 = scmp.ne.s32.totalorder %s1297_s8, %s1298_s9  ;;  %p1304_p8 = scmp.lt.s32.totalorder %s1302_s11, %s1298_s9 }
  0x4f   : > { %v741_v8 = vsel %vm319_vm5, %v740_v60, %v739_v7 }
  0x50   : > { %v743_v9 = vsel %vm322_vm6, %v742_v4, %v741_v8  ;;  %p1300_p5 = pnand %p1299_p4, %p1447_p9  ;;  %p1305_p10 = por %p1304_p8, %p1303_p7 }
  0x51   : > { %918 = vperm.xlu1 %1243, %v913_v63   ;;  %911 = vperm.xlu0 %1242, %v906_v0  }
  0x52   : > { %925 = vperm.xlu2 %1244, %v920_v5   ;;  %1161 = vmatmul.msk.f32.gmra.mxu2 %vm366_vm7, %v743_v9  ;;  %p1301_p6 = pneg %p1300_p5 }
  0x53   : > { %1166 = vmatmul.msk.f32.gmra.mxu3 %vm366_vm7, %v743_v9 }
  0x54   : > { %p1306_p13 = pnand %p1305_p10, %p1301_p6 }
  0x59   : > { %1245 = vset.pattern.permute.xlu1 %v1368_v13  ;;  %932 = vperm.xlu0 %1242, %v927_v10  }
  0x5a   : > { %1011 = vperm.xlu1 %1245, %v1248_v11   ;;  %1246 = vset.pattern.permute.xlu2 %v1368_v13 }
  0x5b   : > { %1015 = vperm.xlu2 %1246, %v1251_v12  }
  0x61   : > { %1247 = vset.pattern.permute.xlu0 %v1368_v13 }
  0x62   : > { %1023 = vperm.xlu1 %1245, %v1249_v14   ;;  %1019 = vperm.xlu0 %1247, %v1250_v15  }
  0x8c   : > { %v1670_v16 = vpop.permute.xlu2 %537 }
  0x8d   : > { %v560_v24 = vperm.slane %v1670_v16, 0  ;;  %v561_v26 = vperm.slane %v1670_v16, 1  ;;  %v562_v27 = vperm.slane %v1670_v16, 2 }
  0x94   : > { %v1672_v17 = vpop.permute.xlu2 %544 }
  0x95   : > { %v564_v28 = vperm.slane %v1672_v17, 0  ;;  %v565_v29 = vperm.slane %v1672_v17, 1  ;;  %v566_v30 = vperm.slane %v1672_v17, 2 }
  0x9c   : > { %v1674_v18 = vpop.permute.xlu2 %788 }
  0x9d   : > { %v811_v31 = vperm.slane %v1674_v18, 0  ;;  %v812_v32 = vperm.slane %v1674_v18, 1  ;;  %v813_v33 = vperm.slane %v1674_v18, 2 }
  0xa3   : > { %v1676_v19 = vpop.permute.xlu1 %424  ;;  %v1678_v20 = vpop.permute.xlu0 %410 }
  0xa4   : > { %v1680_v21 = vpop.permute.xlu2 %809  ;;  %v441_v34 = vperm.slane %v1676_v19, 0  ;;  %v442_v25 = vperm.slane %v1676_v19, 1  ;;  %v443_v37 = vperm.slane %v1676_v19, 2  ;;  %v433_v38 = vperm.slane %v1678_v20, 0 }
  0xa5   : > { %v434_v39 = vperm.slane %v1678_v20, 1  ;;  %v435_v40 = vperm.slane %v1678_v20, 2  ;;  %v823_v41 = vperm.slane %v1680_v21, 0  ;;  %v824_v47 = vperm.slane %v1680_v21, 1 }
  0xab   : > { %v1682_v22 = vpop.permute.xlu1 %431  ;;  %v1684_v23 = vpop.permute.xlu0 %417 }
  0xac   : > { %v445_v3 = vperm.slane %v1682_v22, 0  ;;  %v1714_v49 = vpop.permute.xlu2 %925  ;;  %v446_v52 = vperm.slane %v1682_v22, 1  ;;  %v447_v53 = vperm.slane %v1682_v22, 2  ;;  %v437_v54 = vperm.slane %v1684_v23, 0 }
  0xad   : > { %v438_v57 = vperm.slane %v1684_v23, 1  ;;  %v439_v58 = vperm.slane %v1684_v23, 2  ;;  %v942_v61 = vperm.slane %v1714_v49, 0  ;;  %v943_v6 = vperm.slane %v1714_v49, 1 }
  0xb0   : > { %v392_v51 = vpop.f32.mrf.mxu0  ;;  %v518_v56 = vpop.f32.mrf.mxu1 }
  0xb1   : > { %v449_v62 = vmul.f32 %v433_v38, %v392_v51  ;;  %v453_v63 = vmul.f32 %v437_v54, %v392_v51  ;;  %v457_v0 = vmul.f32 %v441_v34, %v392_v51  ;;  %v461_v1 = vmul.f32 %v445_v3, %v392_v51 }
  0xb2   : > { %v576_v2 = vmul.f32 %v560_v24, %v518_v56  ;;  %v580_v4 = vmul.f32 %v564_v28, %v518_v56 }
  0xb3   : > { %v1704_v42 = vpop.permute.xlu1 %558  ;;  %v1706_v43 = vpop.permute.xlu0 %551  ;;  %v466_v15 = vsel %vm465_vm8, %v449_v62, 0.0  ;;  %v473_v24 = vsel %vm465_vm8, %v453_v63, 0.0  ;;  %v480_v28 = vsel %vm465_vm8, %v457_v0, 0.0  ;;  %v487_v34 = vsel %vm465_vm8, %v461_v1, 0.0 }
  0xb4   : > { %v568_v50 = vperm.slane %v1706_v43, 0  ;;  %v572_v55 = vperm.slane %v1704_v42, 0  ;;  %v573_v10 = vperm.slane %v1704_v42, 1  ;;  %v574_v11 = vperm.slane %v1704_v42, 2 }
  0xb5   : > { %v569_v12 = vperm.slane %v1706_v43, 1  ;;  %v570_v14 = vperm.slane %v1706_v43, 2  ;;  %v592_v38 = vsel %vm465_vm8, %v576_v2, 0.0  ;;  %v599_v3 = vsel %vm465_vm8, %v580_v4, 0.0 }
  0xb6   : > { %v584_v5 = vmul.f32 %v568_v50, %v518_v56  ;;  %v588_v8 = vmul.f32 %v572_v55, %v518_v56 }
  0xb8   : > { %v606_v50 = vsel %vm465_vm8, %v584_v5, 0.0  ;;  %v613_v55 = vsel %vm465_vm8, %v588_v8, 0.0 }
  0xb9   : > { %v395_v63 = vpop.f32.mrf.mxu0  ;;  %v521_v60 = vpop.f32.mrf.mxu1 }
  0xba   : > { %v769_v1 = vpop.f32.mrf.mxu2  ;;  %v1749_v13 = vpop.f32.mrf.mxu3  ;;  %v450_v4 = vmul.f32 %v434_v39, %v395_v63  ;;  %v454_v5 = vmul.f32 %v438_v57, %v395_v63  ;;  %v458_v7 = vmul.f32 %v442_v25, %v395_v63  ;;  %v462_v45 = vmul.f32 %v446_v52, %v395_v63 }
  0xbb   : > { %v1741_v51 = vpop.permute.xlu1 %802  ;;  %v1743_v54 = vpop.permute.xlu0 %795  ;;  %v827_v46 = vmul.f32 %v811_v31, %v769_v1  ;;  %v839_v8 = vmul.f32 %v823_v41, %v769_v1  ;;  %v958_v36 = vmul.f32 %v942_v61, %v1749_v13  ;;  %v577_v48 = vmul.f32 %v561_v26, %v521_v60 }
  0xbc   : > { %v819_v56 = vperm.slane %v1741_v51, 0  ;;  %v815_v62 = vperm.slane %v1743_v54, 0  ;;  %v820_v2 = vperm.slane %v1741_v51, 1  ;;  %v821_v35 = vperm.slane %v1741_v51, 2 }
  0xbd   : > { %v816_v0 = vperm.slane %v1743_v54, 1  ;;  %v467_v39 = vsel %vm465_vm8, %v450_v4, 0.0  ;;  %v843_v57 = vsel %vm465_vm8, %v827_v46, 0.0  ;;  %v817_v59 = vperm.slane %v1743_v54, 2 }
  0xbe   : > { %v835_v9 = vmul.f32 %v819_v56, %v769_v1  ;;  %v831_v31 = vmul.f32 %v815_v62, %v769_v1  ;;  %v474_v41 = vsel %vm465_vm8, %v454_v5, 0.0  ;;  %v481_v61 = vsel %vm465_vm8, %v458_v7, 0.0 }
  0xbf   : > { %v488_v44 = vsel %vm465_vm8, %v462_v45, 0.0  ;;  %v864_v25 = vsel %vm465_vm8, %v839_v8, 0.0  ;;  %v1770_v52 = vsel %vm465_vm8, %v958_v36, 0.0  ;;  %v1772_v63 = vadd.f32 %v467_v39, %v466_v15 }
  0xc0   : > { %2025 = vst [vmem:[#allocation8_spill] sm:$0xff] %v1770_v52  ;;  %v581_v46 = vmul.f32 %v565_v29, %v521_v60  ;;  %v1776_v56 = vadd.f32 %v474_v41, %v473_v24  ;;  %v585_v62 = vmul.f32 %v569_v12, %v521_v60  ;;  %v589_v1 = vmul.f32 %v573_v10, %v521_v60 }
  0xc1   : > { %v593_v7 = vsel %vm465_vm8, %v577_v48, 0.0  ;;  %v1781_v4 = vadd.f32 %v481_v61, %v480_v28  ;;  %v1783_v26 = vadd.f32 %v488_v44, %v487_v34  ;;  %v850_v15 = vsel %vm465_vm8, %v831_v31, 0.0 }
  0xc2   : > { %v600_v36 = vsel %vm465_vm8, %v581_v46, 0.0  ;;  %v1787_v5 = vadd.f32 %v593_v7, %v592_v38  ;;  %v607_v29 = vsel %vm465_vm8, %v585_v62, 0.0  ;;  %v614_v24 = vsel %vm465_vm8, %v589_v1, 0.0  ;;  %v772_v12 = vpop.f32.mrf.mxu2  ;;  %v1791_v60 = vpop.f32.mrf.mxu3 }
  0xc3   : > { %v1779_v45 = vpop.permute.xlu1 %918  ;;  %v828_v10 = vmul.f32 %v812_v32, %v772_v12  ;;  %v832_v44 = vmul.f32 %v816_v0, %v772_v12  ;;  %v857_v28 = vsel %vm465_vm8, %v835_v9, 0.0  ;;  %v1798_v8 = vpop.permute.xlu0 %911  ;;  %v1800_v38 = vadd.f32 %v600_v36, %v599_v3 }
  0xc4   : > { %v938_v48 = vperm.slane %v1779_v45, 0  ;;  %v939_v34 = vperm.slane %v1779_v45, 1  ;;  %v1802_v39 = vadd.f32 %v607_v29, %v606_v50  ;;  %v836_v31 = vmul.f32 %v820_v2, %v772_v12  ;;  %v398_v61 = vpop.f32.mrf.mxu0  ;;  %v524_v36 = vpop.f32.mrf.mxu1 }
  0xc5   : > { %v840_v41 = vmul.f32 %v824_v47, %v772_v12  ;;  %v1806_v46 = vadd.f32 %v614_v24, %v613_v55  ;;  %v844_v32 = vsel %vm465_vm8, %v828_v10, 0.0  ;;  %v851_v0 = vsel %vm465_vm8, %v832_v44, 0.0 }
  0xc6   : > { %v959_v9 = vmul.f32 %v943_v6, %v1791_v60  ;;  %v858_v3 = vsel %vm465_vm8, %v836_v31, 0.0  ;;  %v940_v2 = vperm.slane %v1779_v45, 2  ;;  %v1817_v62 = vmul.f32 %v938_v48, %v1749_v13 }
  0xc7   : > { %v865_v50 = vsel %vm465_vm8, %v840_v41, 0.0  ;;  %v1819_v47 = vadd.f32 %v844_v32, %v843_v57  ;;  %v1821_v55 = vadd.f32 %v851_v0, %v850_v15  ;;  %v1824_v1 = vmul.f32 %v939_v34, %v1791_v60 }
  0xc8   : > { %v934_v7 = vperm.slane %v1798_v8, 0  ;;  %v1827_v6 = vadd.f32 %v858_v3, %v857_v28  ;;  %v935_v29 = vperm.slane %v1798_v8, 1  ;;  %v451_v24 = vmul.f32 %v435_v40, %v398_v61 }
  0xc9   : > { %v455_v12 = vmul.f32 %v439_v58, %v398_v61  ;;  %v1834_v57 = vadd.f32 %v865_v50, %v864_v25  ;;  %v459_v48 = vmul.f32 %v443_v37, %v398_v61  ;;  %v463_v10 = vmul.f32 %v447_v53, %v398_v61 }
  0xca   : > { %2026 = vst [vmem:[#allocation9_spill] sm:$0xff] %v1827_v6  ;;  %v950_v15 = vmul.f32 %v934_v7, %v1749_v13  ;;  %v1842_v44 = vsel %vm465_vm8, %v959_v9, 0.0  ;;  %v951_v28 = vmul.f32 %v935_v29, %v1791_v60  ;;  %v578_v40 = vmul.f32 %v562_v27, %v524_v36 }
  0xcb   : > { %2027 = vst [vmem:[#allocation10_spill] sm:$0xff] %v1842_v44  ;;  %v582_v58 = vmul.f32 %v566_v30, %v524_v36  ;;  %v936_v25 = vperm.slane %v1798_v8, 2  ;;  %v469_v34 = vsel %vm465_vm8, %v451_v24, 0.0  ;;  %v476_v37 = vsel %vm465_vm8, %v455_v12, 0.0  ;;  %v775_v31 = vpop.f32.mrf.mxu2  ;;  %v898_v32 = vpop.f32.mrf.mxu3 }
  0xcc   : > { %v586_v53 = vmul.f32 %v570_v14, %v524_v36  ;;  %v1855_v41 = vsel %vm465_vm8, %v950_v15, 0.0  ;;  %v483_v61 = vsel %vm465_vm8, %v459_v48, 0.0  ;;  %v490_v27 = vsel %vm465_vm8, %v463_v10, 0.0  ;;  %v1870_v50 = vpop.permute.xlu0 %932  ;;  %v401_v12 = vpop.f32.mrf.mxu0 }
  0xcd   : > { %v590_v30 = vmul.f32 %v574_v11, %v524_v36  ;;  %v1862_v0 = vsel %vm465_vm8, %v951_v28, 0.0  ;;  %v829_v9 = vmul.f32 %v813_v33, %v775_v31  ;;  %v833_v14 = vmul.f32 %v817_v59, %v775_v31  ;;  %v527_v52 = vpop.f32.mrf.mxu1 }
  0xce   : > { %v837_v3 = vmul.f32 %v821_v35, %v775_v31  ;;  %v595_v7 = vsel %vm465_vm8, %v578_v40, 0.0  ;;  %v602_v29 = vsel %vm465_vm8, %v582_v58, 0.0  ;;  %v609_v11 = vsel %vm465_vm8, %v586_v53, 0.0 }
  0xcf   : > { %v2028_v36 = vperm.slane %v1680_v21, 2  ;;  %v616_v33 = vsel %vm465_vm8, %v590_v30, 0.0  ;;  %v846_v15 = vsel %vm465_vm8, %v829_v9, 0.0  ;;  %v952_v59 = vmul.f32 %v936_v25, %v898_v32 }
  0xd0   : > { %v1879_v48 = vmul.f32 %v940_v2, %v898_v32  ;;  %v1882_v35 = vsel %vm465_vm8, %v833_v14, 0.0  ;;  %v1885_v10 = vsel %vm465_vm8, %v837_v3, 0.0  ;;  %v946_v28 = vperm.slane %v1870_v50, 0 }
  0xd1   : > { %v841_v24 = vmul.f32 %v2028_v36, %v775_v31  ;;  %2029 = vst [vmem:[#allocation11_spill] sm:$0xff] %v1885_v10  ;;  %v947_v40 = vperm.slane %v1870_v50, 1  ;;  %v948_v58 = vperm.slane %v1870_v50, 2  ;;  %v2030_v53 = vperm.slane %v1678_v20, 3 }
  0xd2   : > { %v2031_v30 = vperm.slane %v1684_v23, 3  ;;  %v2032_v2 = vperm.slane %v1676_v19, 3  ;;  %v2033_v3 = vperm.slane %v1714_v49, 2  ;;  %v2034_v10 = vperm.slane %v1682_v22, 3 }
  0xd3   : > { %v452_v31 = vmul.f32 %v2030_v53, %v401_v12  ;;  %v867_v14 = vsel %vm465_vm8, %v841_v24, 0.0  ;;  %v470_v44 = vadd.f32 %v469_v34, %v1772_v63  ;;  %v969_v20 = vsel %vm465_vm8, %v952_v59, 0.0 }
  0xd4   : > { %v456_v25 = vmul.f32 %v2031_v30, %v401_v12  ;;  %v460_v9 = vmul.f32 %v2032_v2, %v401_v12  ;;  %v1899_v36 = vmul.f32 %v2033_v3, %v898_v32  ;;  %v464_v6 = vmul.f32 %v2034_v10, %v401_v12 }
  0xd5   : > { %v962_v23 = vmul.f32 %v946_v28, %v1749_v13  ;;  %v963_v53 = vmul.f32 %v947_v40, %v1791_v60  ;;  %v471_v19 = vsel %vm465_vm8, %v452_v31, 0.0  ;;  %v964_v30 = vmul.f32 %v948_v58, %v898_v32  ;;  %v778_v58 = vpop.f32.mrf.mxu2 }
  0xd6   : > { %v472_v24 = vadd.f32 %v471_v19, %v470_v44  ;;  %v477_v2 = vadd.f32 %v476_v37, %v1776_v56  ;;  %v478_v3 = vsel %vm465_vm8, %v456_v25, 0.0  ;;  %v485_v22 = vsel %vm465_vm8, %v460_v9, 0.0 }
  0xd7   : > { %v492_v12 = vsel %vm465_vm8, %v464_v6, 0.0  ;;  %v2035_v63 = vperm.slane %v1670_v16, 3  ;;  %v2036_v59 = vperm.slane %v1672_v17, 3  ;;  %v484_v60 = vadd.f32 %v483_v61, %v1781_v4 }
  0xd8   : > { %v491_v10 = vadd.f32 %v490_v27, %v1783_v26  ;;  %v2037_v44 = vperm.slane %v1706_v43, 3  ;;  %v2038_v56 = vperm.slane %v1704_v42, 3  ;;  %v479_v28 = vadd.f32 %v478_v3, %v477_v2 }
  0xd9   : > { %v579_v34 = vmul.f32 %v2035_v63, %v527_v52  ;;  %v583_v13 = vmul.f32 %v2036_v59, %v527_v52  ;;  %v596_v40 = vadd.f32 %v595_v7, %v1787_v5  ;;  %v1925_v17 = vadd.f32 %v485_v22, %v484_v60  ;;  %v1012_v63 = vpop.permute.xlu1 %1011 }
  0xda   : > { %v587_v32 = vmul.f32 %v2037_v44, %v527_v52  ;;  %v591_v37 = vmul.f32 %v2038_v56, %v527_v52  ;;  %v493_v31 = vadd.f32 %v492_v12, %v491_v10  ;;  %v603_v4 = vadd.f32 %v602_v29, %v1800_v38 }
  0xdb   : > { %v597_v6 = vsel %vm465_vm8, %v579_v34, 0.0  ;;  %v604_v16 = vsel %vm465_vm8, %v583_v13, 0.0  ;;  %v610_v61 = vadd.f32 %v609_v11, %v1802_v39  ;;  %v617_v42 = vadd.f32 %v616_v33, %v1806_v46  ;;  %v901_v39 = vpop.f32.mrf.mxu3 }
  0xdc   : > { %v618_v26 = vsel %vm465_vm8, %v591_v37, 0.0  ;;  %v598_v43 = vadd.f32 %v597_v6, %v596_v40  ;;  %v818_v52 = vperm.slane %v1743_v54, 3  ;;  %v605_v5 = vadd.f32 %v604_v16, %v603_v4 }
  0xdd   : > { %v611_v27 = vsel %vm465_vm8, %v587_v32, 0.0  ;;  %v2039_v7 = vperm.slane %v1674_v18, 3  ;;  %v2040_v9 = vperm.slane %v1680_v21, 3  ;;  %v619_v2 = vadd.f32 %v618_v26, %v617_v42 }
  0xde   : > { %v822_v38 = vperm.slane %v1741_v51, 3  ;;  %v834_v29 = vmul.f32 %v818_v52, %v778_v58  ;;  %v847_v3 = vadd.f32 %v846_v15, %v1819_v47  ;;  %v620_v11 = vadd.f32 %v598_v43, %v472_v24  ;;  %v2042_v52 = vld [vmem:[#allocation8_spill] sm:$0xff] }
  0xdf   : > { %v830_v25 = vmul.f32 %v2039_v7, %v778_v58  ;;  %v842_v19 = vmul.f32 %v2040_v9, %v778_v58  ;;  %v937_v54 = vperm.slane %v1798_v8, 3  ;;  %v941_v33 = vperm.slane %v1779_v45, 3 }
  0xe0   : > { %v838_v22 = vmul.f32 %v822_v38, %v778_v58  ;;  %v949_v21 = vperm.slane %v1870_v50, 3  ;;  %v855_v51 = vsel %vm465_vm8, %v834_v29, 0.0  ;;  %v968_v15 = vadd.f32 %v1862_v0, %v1855_v41 }
  0xe1   : > { %v848_v46 = vsel %vm465_vm8, %v830_v25, 0.0  ;;  %v869_v12 = vsel %vm465_vm8, %v842_v19, 0.0  ;;  %v953_v34 = vmul.f32 %v937_v54, %v901_v39  ;;  %v957_v47 = vmul.f32 %v941_v33, %v901_v39  ;;  %v1020_v54 = vpop.permute.xlu0 %1019 }
  0xe2   : > { %v849_v18 = vadd.f32 %v848_v46, %v847_v3  ;;  %v2041_v8 = vperm.slane %v1714_v49, 3  ;;  %v965_v45 = vmul.f32 %v949_v21, %v901_v39  ;;  %v868_v13 = vadd.f32 %v867_v14, %v1834_v57 }
  0xe3   : > { %v970_v60 = vadd.f32 %v969_v20, %v968_v15  ;;  %v971_v10 = vsel %vm465_vm8, %v953_v34, 0.0  ;;  %v987_v50 = vsel %vm465_vm8, %v962_v23, 0.0  ;;  %v988_v44 = vsel %vm465_vm8, %v963_v53, 0.0 }
  0xe4   : > { %v871_v24 = vadd.f32 %v849_v18, %v620_v11  ;;  %v961_v59 = vmul.f32 %v2041_v8, %v901_v39  ;;  %v623_v32 = vadd.f32 %v619_v2, %v493_v31  ;;  %v870_v56 = vadd.f32 %v869_v12, %v868_v13  ;;  %v1016_v2 = vpop.permute.xlu2 %1015 }
  0xe5   : > { %v989_v37 = vadd.f32 %v988_v44, %v987_v50  ;;  %v990_v40 = vsel %vm465_vm8, %v964_v30, 0.0  ;;  %v972_v41 = vadd.f32 %v971_v10, %v970_v60  ;;  %v992_v49 = vsel %vm465_vm8, %v965_v45, 0.0 }
  0xe6   : > { %v854_v0 = vadd.f32 %v1882_v35, %v1821_v55  ;;  %v973_v57 = vsel %vm465_vm8, %v1817_v62, 0.0  ;;  %v874_v14 = vadd.f32 %v870_v56, %v623_v32  ;;  %v974_v23 = vsel %vm465_vm8, %v1824_v1, 0.0 }
  0xe7   : > { %v991_v20 = vadd.f32 %v990_v40, %v989_v37  ;;  %v976_v53 = vsel %vm465_vm8, %v1879_v48, 0.0  ;;  %v994_v30 = vadd.f32 %v972_v41, %v871_v24  ;;  %v621_v6 = vadd.f32 %v605_v5, %v479_v28  ;;  %v2043_v48 = vld [vmem:[#allocation10_spill] sm:$0xff]  ;;  %v2044_v28 = vld [vmem:[#allocation9_spill] sm:$0xff]  ;;  %v2045_v5 = vld [vmem:[#allocation11_spill] sm:$0xff] }
  0xe8   : > { %v856_v16 = vadd.f32 %v855_v51, %v854_v0  ;;  %v975_v58 = vadd.f32 %v974_v23, %v973_v57  ;;  %v612_v31 = vadd.f32 %v611_v27, %v610_v61  ;;  %v862_v4 = vsel %vm465_vm8, %v838_v22, 0.0  ;;  %v1024_v61 = vpop.permute.xlu1 %1023 }
  0xe9   : > { %v993_v55 = vadd.f32 %v992_v49, %v991_v20  ;;  %v978_v35 = vsel %vm465_vm8, %v957_v47, 0.0  ;;  %v1026_v62 = vadd.f32 %v1012_v63, %v994_v30  ;;  %v983_v42 = vsel %vm465_vm8, %v1899_v36, 0.0 }
  0xea   : > { %v872_v26 = vadd.f32 %v856_v16, %v621_v6  ;;  %v977_v43 = vadd.f32 %v976_v53, %v975_v58  ;;  %v982_v7 = vadd.f32 %v2043_v48, %v2042_v52  ;;  %v861_v25 = vadd.f32 %v2045_v5, %v2044_v28 }
  0xeb   : > { %v997_v1 = vadd.f32 %v993_v55, %v874_v14  ;;  %1030 = vst.msk [vmem:[%s235_s22] sm:$0xff] %vm465_vm8, %v1026_v62  ;;  %v985_v9 = vsel %vm465_vm8, %v961_v59, 0.0  ;;  %v622_v36 = vadd.f32 %v612_v31, %v1925_v17 }
  0xec   : > { %v979_v27 = vadd.f32 %v978_v35, %v977_v43  ;;  %v984_v38 = vadd.f32 %v983_v42, %v982_v7  ;;  %v863_v29 = vadd.f32 %v862_v4, %v861_v25 }
  0xed   : > { %v1029_v19 = vadd.f32 %v1024_v61, %v997_v1 }
  0xee   : > { %v995_v3 = vadd.f32 %v979_v27, %v872_v26  ;;  %v986_v39 = vadd.f32 %v985_v9, %v984_v38  ;;  %v873_v11 = vadd.f32 %v863_v29, %v622_v36 }
  0xef   : > { %1033 = vst.msk [vmem:[%s235_s22 + $0x18] sm:$0xff] %vm465_vm8, %v1029_v19 }
  0xf0   : > { %v1027_v46 = vadd.f32 %v1016_v2, %v995_v3  ;;  %v996_v33 = vadd.f32 %v986_v39, %v873_v11 }
  0xf2   : > { %1031 = vst.msk [vmem:[%s235_s22 + $0x8] sm:$0xff] %vm465_vm8, %v1027_v46  ;;  %v1028_v17 = vadd.f32 %v1020_v54, %v996_v33 }
  0xf4   : > { %1032 = vst.msk [vmem:[%s235_s22 + $0x10] sm:$0xff] %vm465_vm8, %v1028_v17 }
  0xf5   : > { %1309 = shalt.err (!%p1306_p13)
}
  0xf6   : > { %s1369_s24 = smov 128   ;;  %s1370_s14 = smov 8  }
  0xf7   : > { %1177 = dma.vmem_to_hbm [thread:$0]  (%p1447_p9), %s1049_s25, 512, %s1051_s5, %s1035_s7, %s1369_s24, %s1369_s24, %s1370_s14  }
  0xf8 PF: > { %s1065_s21 = sand.u32 1, %s1344_s15   ;;  %p1184_p0 = pnand %p1140_p12, %p1454_p11 }
  0xf9   : > { %s1066_s22 = scalar_lea.sflag [#allocation4], %s1065_s21 }
  0xfa   : > { %p1185_p1 = pneg %p1184_p0 }
  0xfc   : > { %1339 = dma.done.wait (%p1185_p1), %s1066_s22, 512  }
  0xfd   : > { %1341 = vsyncadd (%p1185_p1), %s1066_s22, 4294966784  ;;  %s20_s20 = sadd.s32 1, %s1364_s20   ;;  %s2046_s15 = smov %s1348_s16 }
  0xfe   : > { %p17_p2 = scmp.ge.s32.totalorder %s20_s20, 4   ;;  %s2047_s16 = smov %s1352_s17 }
  0xff   : > { %s2048_s17 = smov %s1452_s29  ;;  %s2049_s18 = smov %s1360_s19 }
 0x100   : > { %s2050_s19 = smov %s2052_s23  ;;  %19 = sbr.rel (!%p17_p2) target bundleno = 6 (0x6), region = 85 }
 0x105   :  { %1072 = vsyncpa [#allocation3], 1 }
 0x106   :  { %1074 = vsyncpa [#allocation3 + $0x1], 1 }
 0x107   :  { %1075 = vsyncpa [#allocation4], 1 }
 0x108   :  { %1077 = vsyncpa [#allocation4 + $0x1], 1 }

</bundles_post_ra>
